<compile_context>
chip_gen: v6e
topology: v6e:2x2x1
jax: 0.10.0
libtpu: 0.0.40
codegen_flags: <defaults>
</compile_context>

<pallas_src>
import functools

import jax
import jax.numpy as jnp
from jax.experimental import pallas as pl
from jax.experimental.pallas import tpu as pltpu


def _center_loss_kernel(feats_ref, labels_ref, centers_ref, out_ref, *,
                        tile_b, num_classes, batch, has_tail):
    i = pl.program_id(0)

    feats = feats_ref[...].astype(jnp.float32)         # (TILE_B, D) f32 working copy
    labels = labels_ref[...]                            # (TILE_B, 1) int32

    # In-kernel gather of class centers via a one-hot matmul on the MXU.
    # Operands stay in the centers' native dtype (0/1 are exact in bf16);
    # accumulation happens in f32 via preferred_element_type.
    # TODO(synk): for very large num_classes*feat_dim (table no longer VMEM
    # resident), add an innermost "arbitrary" class-chunk grid axis that
    # streams center chunks and accumulates `gathered` in a VMEM scratch.
    class_ids = jax.lax.broadcasted_iota(jnp.int32, (tile_b, num_classes), 1)
    onehot = (labels == class_ids).astype(centers_ref.dtype)      # (TILE_B, C)
    gathered = jnp.dot(onehot, centers_ref[...],
                       preferred_element_type=jnp.float32)        # (TILE_B, D) f32

    diff = feats - gathered
    row_sums = jnp.sum(diff * diff, axis=1, keepdims=True)        # (TILE_B, 1)

    if has_tail:
        # Only compiled in when batch % tile_b != 0; mask cost is TILE_B elems.
        row_ids = i * tile_b + jax.lax.broadcasted_iota(jnp.int32, (tile_b, 1), 0)
        row_sums = jnp.where(row_ids < batch, row_sums, jnp.float32(0.0))

    out_ref[0, 0] = jnp.sum(row_sums)


def center_loss(features: jax.Array, labels: jax.Array,
                centers: jax.Array, *, tile_b: int = 1024) -> jax.Array:
    """Pallas equivalent of CenterLoss.forward(features, labels)."""
    batch, feat_dim = features.shape
    num_classes, feat_dim_c = centers.shape
    assert feat_dim == feat_dim_c
    labels2d = labels.astype(jnp.int32).reshape(batch, 1)

    def round8(x):
        return ((x + 7) // 8) * 8

    # Tile size: multiple of 8, no larger than the (8-rounded) batch, and small
    # enough that we get >= 2 grid blocks when the batch permits (so the
    # "parallel" axis can shard across both TensorCores on v7x).
    tile_b = max(8, min(tile_b, round8(batch)))
    if batch > 8:
        tile_b = min(tile_b, round8(pl.cdiv(batch, 2)))

    c_bytes = centers.dtype.itemsize
    f_bytes = features.dtype.itemsize

    # VMEM budget: double-buffered feature/label tiles, the (default
    # double-buffered) resident centers table, the one-hot intermediate and
    # the f32 working copies (feats / gathered / diff), plus slack.
    def vmem_need(tb):
        return (2 * num_classes * feat_dim * c_bytes   # centers (2 bufs, default)
                + 2 * tb * feat_dim * f_bytes          # feature tiles
                + 2 * tb * 4                           # label tiles (int32)
                + tb * num_classes * c_bytes           # one-hot intermediate
                + 3 * tb * feat_dim * 4                # f32 feats / gathered / diff
                + (2 << 20))                           # scratch / packing slack

    # Generation-aware cap: ~48 MiB of v7x's 64 MiB, ~96 MiB of v5e/v6e's 128 MiB.
    try:
        phys_vmem = int(pltpu.get_tpu_info().vmem_capacity_bytes)
    except Exception:
        phys_vmem = 64 * 1024 * 1024                   # conservative (v7x-sized)
    vmem_cap = min((phys_vmem * 3) // 4, 112 * 1024 * 1024)

    while tile_b > 8 and vmem_need(tile_b) > vmem_cap:
        tile_b = max(8, round8(tile_b // 2))
    vmem_limit = int(min(phys_vmem, max(vmem_need(tile_b), 4 * 1024 * 1024)))

    num_blocks = pl.cdiv(batch, tile_b)
    has_tail = (batch % tile_b) != 0

    kernel = functools.partial(_center_loss_kernel, tile_b=tile_b,
                               num_classes=num_classes, batch=batch,
                               has_tail=has_tail)

    partials = pl.pallas_call(
        kernel,
        out_shape=jax.ShapeDtypeStruct((num_blocks, 1), jnp.float32),
        grid_spec=pltpu.PrefetchScalarGridSpec(
            num_scalar_prefetch=0,
            grid=(num_blocks,),
            in_specs=[
                # features: (TILE_B, feat_dim) tile of the batch (partial tail
                # block handled by Pallas; masked in-kernel).
                pl.BlockSpec((tile_b, feat_dim), lambda i: (i, 0)),
                # labels: (TILE_B, 1) tile.
                pl.BlockSpec((tile_b, 1), lambda i: (i, 0)),
                # centers: whole table, VMEM-resident (constant index map ->
                # fetched once across the grid).
                # TODO(synk): single-buffer / class-chunk this on v7x when
                # num_classes*feat_dim approaches the 64 MiB VMEM.
                pl.BlockSpec((num_classes, feat_dim), lambda i: (0, 0)),
            ],
            out_specs=pl.BlockSpec((1, 1), lambda i: (i, 0),
                                   memory_space=pltpu.SMEM),
        ),
        compiler_params=pltpu.CompilerParams(
            dimension_semantics=("parallel",),   # per-block partials: race-free
            vmem_limit_bytes=vmem_limit,
        ),
    )(features, labels2d, centers)

    # MSELoss default reduction='mean'.
    return jnp.sum(partials) / jnp.float32(batch * feat_dim)


if __name__ == "__main__":
    # Shapes implied by CenterLoss(num_classes, feat_dim): small synthetic sizes.
    num_classes = 10
    feat_dim = 32
    batch = 8

    key = jax.random.PRNGKey(0)
    k_centers, k_feats, k_labels = jax.random.split(key, 3)

    # Deterministic parameter init (torch.randn -> standard normal).
    centers = jax.random.normal(k_centers, (num_classes, feat_dim), dtype=jnp.float32)
    features = jax.random.normal(k_feats, (batch, feat_dim), dtype=jnp.float32)
    labels = jax.random.randint(k_labels, (batch,), 0, num_classes, dtype=jnp.int32)

    loss = jax.block_until_ready(center_loss(features, labels, centers))
    ref = jnp.mean((features - centers[labels]) ** 2)
    assert jnp.allclose(loss, ref, rtol=1e-5, atol=1e-5), (loss, ref)

    # Tail-masking / multi-block check: batch not a multiple of the tile size.
    batch2 = 13
    k_f2, k_l2 = jax.random.split(k_feats)
    features2 = jax.random.normal(k_f2, (batch2, feat_dim), dtype=jnp.float32)
    labels2 = jax.random.randint(k_l2, (batch2,), 0, num_classes, dtype=jnp.int32)
    loss2 = jax.block_until_ready(center_loss(features2, labels2, centers))
    ref2 = jnp.mean((features2 - centers[labels2]) ** 2)
    assert jnp.allclose(loss2, ref2, rtol=1e-5, atol=1e-5), (loss2, ref2)

    print("KERNEL_OK")
</pallas_src>

<mosaic_0001>
module attributes {stable_mosaic.version = 11 : i64} {
  func.func @_center_loss_kernel(%arg0: i32, %arg1: memref<8x32xf32, #tpu.memory_space<vmem>>, %arg2: memref<8x1xi32, #tpu.memory_space<vmem>>, %arg3: memref<10x32xf32, #tpu.memory_space<vmem>>, %arg4: memref<1x1xf32, #tpu.memory_space<smem>>) attributes {dimension_semantics = [#tpu.dimension_semantics<parallel>], iteration_bounds = array<i64: 1>, scalar_prefetch = 0 : i64, scratch_operands = 0 : i64, tpu.core_type = #tpu.core_type<tc>, window_params = [{transform_indices = @transform_0, window_bounds = array<i64: 8, 32>}, {transform_indices = @transform_1, window_bounds = array<i64: 8, 1>}, {pipeline_mode = #tpu.pipeline_mode<synchronous>, transform_indices = @transform_2, window_bounds = array<i64: 10, 32>}, {transform_indices = @transform_3, window_bounds = array<i64: 1, 1>}]} {
    %c0 = arith.constant 0 : index
    %c0_0 = arith.constant 0 : index
    %0 = vector.load %arg1[%c0, %c0_0] : memref<8x32xf32, #tpu.memory_space<vmem>>, vector<8x32xf32>
    %c0_1 = arith.constant 0 : index
    %c0_2 = arith.constant 0 : index
    %1 = vector.load %arg2[%c0_1, %c0_2] : memref<8x1xi32, #tpu.memory_space<vmem>>, vector<8x1xi32>
    %2 = tpu.iota {dimensions = array<i32: 1>} : vector<8x10xi32>
    %3 = vector.broadcast %1 : vector<8x1xi32> to vector<8x10xi32>
    %4 = arith.cmpi eq, %3, %2 : vector<8x10xi32>
    %5 = arith.extui %4 : vector<8x10xi1> to vector<8x10xi32>
    %6 = arith.sitofp %5 : vector<8x10xi32> to vector<8x10xf32>
    %c0_3 = arith.constant 0 : index
    %c0_4 = arith.constant 0 : index
    %7 = vector.load %arg3[%c0_3, %c0_4] : memref<10x32xf32, #tpu.memory_space<vmem>>, vector<10x32xf32>
    %cst = arith.constant dense<0.000000e+00> : vector<8x32xf32>
    %8 = tpu.matmul %6, %7, %cst {dimension_numbers = #tpu.dot_dimension_numbers<[1], [0], [0], [1], [0, 0, 1, 1], [], []>} : vector<8x10xf32>, vector<10x32xf32>, vector<8x32xf32> -> vector<8x32xf32>
    %9 = arith.subf %0, %8 : vector<8x32xf32>
    %10 = arith.mulf %9, %9 : vector<8x32xf32>
    %cst_5 = arith.constant dense<0.000000e+00> : vector<8xf32>
    %11 = vector.multi_reduction <add>, %10, %cst_5 [1] : vector<8x32xf32> to vector<8xf32>
    %12 = vector.shape_cast %11 : vector<8xf32> to vector<8x1xf32>
    %13 = vector.shape_cast %12 : vector<8x1xf32> to vector<1x8x1xf32>
    %cst_6 = arith.constant dense<0.000000e+00> : vector<1xf32>
    %14 = vector.multi_reduction <add>, %13, %cst_6 [1, 2] : vector<1x8x1xf32> to vector<1xf32>
    %15 = vector.shape_cast %14 : vector<1xf32> to vector<1x1x1xf32>
    %16 = vector.extract %15[0, 0, 0] : f32 from vector<1x1x1xf32>
    %c0_7 = arith.constant 0 : index
    %c0_8 = arith.constant 0 : index
    %17 = memref.load %arg4[%c0_7, %c0_8] : memref<1x1xf32, #tpu.memory_space<smem>>
    memref.store %16, %arg4[%c0_7, %c0_8] : memref<1x1xf32, #tpu.memory_space<smem>>
    return
  }
  func.func @transform_0(%arg0: i32) -> (i32, i32) {
    %c0_i32 = arith.constant 0 : i32
    %c0_i32_0 = arith.constant 0 : i32
    return %arg0, %c0_i32 : i32, i32
  }
  func.func @transform_1(%arg0: i32) -> (i32, i32) {
    %c0_i32 = arith.constant 0 : i32
    %c0_i32_0 = arith.constant 0 : i32
    return %arg0, %c0_i32 : i32, i32
  }
  func.func @transform_2(%arg0: i32) -> (i32, i32) {
    %c0_i32 = arith.constant 0 : i32
    %c0_i32_0 = arith.constant 0 : i32
    %c0_i32_1 = arith.constant 0 : i32
    return %c0_i32, %c0_i32_0 : i32, i32
  }
  func.func @transform_3(%arg0: i32) -> (i32, i32) {
    %c0_i32 = arith.constant 0 : i32
    %c0_i32_0 = arith.constant 0 : i32
    return %arg0, %c0_i32 : i32, i32
  }
}

</mosaic_0001>

<bundles_post_ra>
// kernel: tpu_custom_call.1
= control target key start
LH: loop header
LB: loop body
LE: loop exit
PB: predicated region body
PF: predicated region fallthrough
CT: control target
= control target key end

     0   :  { %8 = vsyncpa [#allocation3], 0  ;;  %s246_s0 = inlined_call_operand.vmem [shape: f32[8,32], index: 0, kind: input, shape index: {}]   ;;  %s247_s1 = inlined_call_operand.vmem [shape: s32[8,1], index: 1, kind: input, shape index: {}]   ;;  %s248_s2 = inlined_call_operand.hbm [shape: f32[10,32], index: 2, kind: input, shape index: {}]   ;;  %s249_s3 = inlined_call_operand.hbm [shape: f32[1,1], index: 3, kind: output, shape index: {}]  }
   0x1   :  { %9 = vsyncpa [#allocation4], 0  ;;  %s207_s12 = smov [#allocation2]  }
   0x2   :  { %s19_s13 = sshll.u32 %s207_s12, 4  ;;  %s20_s13 = int_to_ptr.vmem [resolvable:$true] %s19_s13 }
   0x3   :  { %s183_s14 = scalar_lea.vmem %s20_s13, 256  ;;  %p188_p1 = scmp.lt.s32.totalorder %s20_s13, %s20_s13 }
   0x4   :  { %p184_p0 = scmp.ne.s32.totalorder %s20_s13, %s183_s14  ;;  %p189_p2 = scmp.lt.s32.totalorder %s183_s14, %s183_s14 }
   0x6   :  { %p190_p3 = por %p189_p2, %p188_p1 }
   0x8   :  { %p191_p4 = pnand %p190_p3, %p184_p0 }
   0xa   :  { %194 = shalt.err (!%p191_p4)
}
   0xb   :  { %s208_s15 = smov 128   ;;  %s209_s16 = smov 8  }
   0xc   :  { %25 = dma.hbm_to_vmem [thread:$0]  %s248_s2, 256, %s20_s13, [#allocation3], %s208_s15, %s208_s15, %s209_s16  }
   0xd   :  { %203 = dma.done.wait [#allocation3], 256  }
   0xe   :  { %204 = vsyncadd [#allocation3], 4294967040  ;;  %v210_v0 = vmov 0   ;;  %v211_v1 = vmov 0.0   ;;  %vm45_vm0 = vcmask 1041408   ;;  %vm212_vm1 = vmmov 0  }
   0xf   :  { %174 = vset.pattern.permute.xlu0 %v210_v0  ;;  %158 = vmatprep.subr.mxu0 %v211_v1  ;;  %v30_v2 = vld [vmem:[%s247_s1] sm:$0xff]  ;;  %v40_v3 = vld [vmem:[#allocation2 + $0x8] sm:$0x3]  ;;  %v31_v5 = vlaneseq  ;;  %vm41_vm2 = vcmask 80896   ;;  %vm121_vm4 = vcmask 261120   ;;  %vm125_vm5 = vcmask 7168  }
  0x10   :  { %162 = vmatprep.mubr.msk.f32.mxu0 %vm212_vm1, %v211_v1  ;;  %v39_v4 = vld [vmem:[#allocation2] sm:$0xff]  ;;  %34 = vperm.xlu0 %174, %v30_v2   ;;  %s213_s1 = smov [#allocation5]  }
  0x11   :  { %159 = vmatpush3.msk.msra.mxu0 %vm45_vm0, %v40_v3  ;;  %v32_v6 = vand.u32 127, %v31_v5  ;;  %v29_v9 = vld [vmem:[%s246_s0] sm:$0xff] }
  0x12   :  { %160 = vmatprep.subr.mxu0 %v211_v1 }
  0x13   :  { %161 = vmatpush3.msra.mxu0 %v39_v4 }
  0x8b   :  { %v35_v7 = vpop.permute.xlu0 %34 }
  0x8c   :  { %vm36_vm3 = vcmp.eq.s32.totalorder %v35_v7, %v32_v6 }
  0x8d   :  { %v152_v8 = vsel %vm36_vm3, 1.0, %v211_v1 }
  0x8e   :  { %163 = vmatmul.mubr.msk.f32.vlgmr.msra.gmra.mxu0 %vm41_vm2, %v152_v8 }
 0x14e   :  { %v115_v10 = vpop.f32.mrf.mxu0 }
 0x14f   :  { %v119_v11 = vsub.f32 %v29_v9, %v115_v10 }
 0x150   :  { %v164_v12 = vpop.f32.mrf.mxu0 }
 0x151   :  { %v120_v13 = vmul.f32 %v119_v11, %v119_v11 }
 0x153   :  { %v122_v14 = vsel %vm121_vm4, %v120_v13, 0.0 }
 0x154   :  { %123 = vadd.xlane.f32.xlu0 %v122_v14 }
 0x1dd   :  { %v124_v15 = vpop.xlane.xlu0 %123 }
 0x1de   :  { %v126_v16 = vsel %vm125_vm5, %v124_v15, 0.0 }
 0x1df   :  { %127 = vadd.xlane.f32.xlu1 %v126_v16 }
 0x268   :  { %v128_v17 = vpop.xlane.xlu1 %127 }
 0x269   :  { %v129_v18 = vrot.slane %v128_v17, 4 }
 0x26b   :  { %v130_v19 = vadd.f32 %v129_v18, %v128_v17 }
 0x26d   :  { %v131_v20 = vrot.slane %v130_v19, 2 }
 0x26f   :  { %v132_v21 = vadd.f32 %v131_v20, %v130_v19 }
 0x271   :  { %v133_v22 = vrot.slane %v132_v21, 1 }
 0x273   :  { %v134_v23 = vadd.f32 %v133_v22, %v132_v21 }
 0x275   :  { %165 = vpush %v134_v23 }
 0x2a6   :  { %s166_s0 = spop %165 }
 0x2a7   :  { %137 = sst [smem:[#allocation5]] %s166_s0 }
 0x2a8   :  { %145 = dma.smem_to_hbm %s213_s1, 16, %s249_s3, [#allocation4]  }
 0x2a9   :  { %205 = dma.done.wait [#allocation4], 16  }
 0x2aa   :  { %206 = vsyncadd [#allocation4], 4294967280 }
 0x2ab   :  { %149 = sfence }
 0x2ac   :  { %150 = vsyncpa [#allocation3], 1 }
 0x2ad   :  { %151 = vsyncpa [#allocation4], 1 }

</bundles_post_ra>
